<compile_context>
chip_gen: v5e
topology: v5e:2x2
jax: 0.10.0
libtpu: 0.0.40
codegen_flags: <defaults>
</compile_context>

<pallas_src>
import math
import functools

import numpy as np
import jax
import jax.numpy as jnp
from jax.experimental import pallas as pl
from jax.experimental.pallas import tpu as pltpu


def _round_up(v, m):
    return (v + m - 1) // m * m


def _pick_qb(Q, qb_max):
    """Largest per-step batch tile <= qb_max, preferring (even #steps, no padded block)."""
    qb_max = max(1, min(int(qb_max), int(Q)))
    best, best_key = 1, None
    for cand in range(1, qb_max + 1):
        steps = -(-Q // cand)
        pad = steps * cand - Q
        # lexicographic: even step count (megacore) > minimal padding > fewer steps
        key = (1 if (steps % 2 == 1 and Q >= 2) else 0, pad, steps)
        if best_key is None or key < best_key:
            best, best_key = cand, key
    return best


def cheb_time_kernel(x_ref, lap_ref, w_ref, b_ref, o_ref, *, K, QB, HF, G):
    """One grid step processes QB batch elements.

    x_ref:   (N, QB*HF)   bf16 input features, columns q-major / hf-minor (Tx_0)
    lap_ref: (N, N)       bf16 dense normalized Laplacian (grid-invariant)
    w_ref:   (K*HF, G)    bf16 Chebyshev weights, order k in rows [k*HF, (k+1)*HF)
    b_ref:   (1, G)       f32 bias
    o_ref:   (N, QB*G)    f32 output, columns q-major / g-minor
    """
    cdt = x_ref.dtype
    x0 = x_ref[...]                                           # (N, QB*HF) bf16

    def project(t, k):
        """Accumulate Tx_k @ W_k (+ bias at k == 0) into the output block."""
        wk = w_ref[k * HF:(k + 1) * HF, :]                    # (HF, G) bf16, static slice
        for q in range(QB):                                   # lane-aligned 128-mult slices
            p = jnp.dot(t[:, q * HF:(q + 1) * HF], wk,
                        preferred_element_type=jnp.float32)   # (N, G) f32 on the MXU
            if k == 0:
                o_ref[:, q * G:(q + 1) * G] = p + b_ref[...]
            else:
                o_ref[:, q * G:(q + 1) * G] += p

    project(x0, 0)                                            # Tx_0 = X
    if K > 1:
        lap = lap_ref[...]                                    # loaded once per grid step
        # Tx_1 = L @ X : ONE wide (N,N)x(N,QB*HF) MXU matmul across all QB batch elements.
        t1_f = jnp.dot(lap, x0, preferred_element_type=jnp.float32)
        t1 = t1_f.astype(cdt)
        project(t1, 1)
        prev_f = x0.astype(jnp.float32)                       # Tx_{k-2}, f32 for the combine
        cur = t1
        cur_f = t1_f
        for k in range(2, K):
            # Tx_k = 2 * L @ Tx_{k-1} - Tx_{k-2}   (matmul bf16 -> f32 acc; combine in f32)
            nxt_f = 2.0 * jnp.dot(lap, cur, preferred_element_type=jnp.float32) - prev_f
            nxt = nxt_f.astype(cdt)
            project(nxt, k)
            prev_f, cur_f, cur = cur_f, nxt_f, nxt


def cheb_time_conv(x, edge_index, edge_weight, weight, bias, *, qb=None,
                   compute_dtype=jnp.bfloat16):
    """JAX/Pallas equivalent of ChebTimeConv.forward.

    x:           (Q, N, H, F) float32
    edge_index:  (2, E) int (numpy/jnp, evaluated eagerly -- glue)
    edge_weight: (E,) float32 or None
    weight:      (K, H, F, G) float32
    bias:        (G,) float32 or None
    returns:     (Q, N, G) float32
    """
    Q, N, H, F = x.shape
    K, Hw, Fw, G = weight.shape
    assert (Hw, Fw) == (H, F)
    HF = H * F
    MiB = 1024 * 1024

    # ---- glue: remove self loops, unweighted degree(row), densify the Laplacian ----
    row = np.asarray(edge_index[0])
    col = np.asarray(edge_index[1])
    keep = row != col
    row = row[keep]
    col = col[keep]
    E = int(row.shape[0])
    if edge_weight is None:
        ew_np = np.ones((E,), np.float32)
    else:
        ew_np = np.asarray(edge_weight)[keep].astype(np.float32)
    row_j = jnp.asarray(row, jnp.int32)
    col_j = jnp.asarray(col, jnp.int32)
    deg = jax.ops.segment_sum(jnp.ones((E,), jnp.float32), row_j, num_segments=N)
    dinv = jnp.where(deg > 0, deg ** -0.5, 0.0)                     # inf -> 0
    lap_vals = -dinv[row_j] * jnp.asarray(ew_np) * dinv[col_j]
    lap = jnp.zeros((N, N), jnp.float32).at[row_j, col_j].add(lap_vals)

    # ---- padding (zero padding is exact) ----
    # bf16 sublane pack wants 16; lane-dense lap columns / unmasked MXU want 128 once N
    # is big enough that the pad is cheap.
    N_pad = _round_up(N, 128) if N >= 64 else _round_up(N, 16)
    HF_pad = _round_up(HF, 128)
    G_pad = _round_up(G, 128)
    cbytes = jnp.dtype(compute_dtype).itemsize

    # ---- per-generation VMEM budget ----
    try:
        vmem_cap = int(pltpu.get_tpu_info().vmem_capacity_bytes)
    except Exception:
        vmem_cap = 64 * MiB                       # conservative: v7x per-TensorCore size
    if vmem_cap >= 100 * MiB:                     # v5e / v6e: 128 MiB physical
        budget = (3 * vmem_cap) // 4              # ~96 MiB of tiles
        limit_cap = min(vmem_cap - 16 * MiB, 112 * MiB)
    else:                                         # v7x (64 MiB per TC) or unknown
        budget = min(vmem_cap - 16 * MiB, 48 * MiB)
        limit_cap = min(vmem_cap - 8 * MiB, 56 * MiB)
    budget = max(budget, 8 * MiB)
    limit_cap = max(limit_cap, 16 * MiB)

    # Grid-invariant (single-buffered) operands + Mosaic internal-scratch headroom.
    fixed = (N_pad * N_pad * cbytes               # lap
             + K * HF_pad * G_pad * cbytes        # weights
             + G_pad * 4                          # bias
             + 2 * MiB)                           # internal scratch headroom
    # Per batch-element VMEM, now including the f32 out block and the in-kernel f32
    # recursion temporaries (previously un-counted).
    per_q = (2 * N_pad * HF_pad * cbytes          # x block (double-buffered)
             + 2 * N_pad * G_pad * 4              # out block (f32, double-buffered)
             + N_pad * HF_pad * (3 * 4 + 2 * cbytes))   # Tx_{k-2}/Tx_{k-1}/Tx_k f32 + bf16

    if qb is None:
        qb_max = (budget - fixed) // per_q if budget > fixed else 1
        qb = _pick_qb(Q, qb_max)
    qb = int(max(1, min(int(qb), Q)))
    Q_pad = _round_up(Q, qb)
    steps = Q_pad // qb

    need = fixed + qb * per_q
    vmem_limit = int(min(limit_cap, max(16 * MiB, (5 * need) // 4)))

    # ---- pack operands: x as a 2-D (N_pad, Q_pad*HF_pad) slab, columns q-major ----
    x_p = jnp.zeros((N_pad, Q_pad, HF_pad), compute_dtype)
    x_p = x_p.at[:N, :Q, :HF].set(
        jnp.transpose(x.reshape(Q, N, HF), (1, 0, 2)).astype(compute_dtype))
    x_p = x_p.reshape(N_pad, Q_pad * HF_pad)

    lap_p = jnp.zeros((N_pad, N_pad), compute_dtype).at[:N, :N].set(lap.astype(compute_dtype))

    w_p = jnp.zeros((K, HF_pad, G_pad), compute_dtype)
    w_p = w_p.at[:, :HF, :G].set(weight.reshape(K, HF, G).astype(compute_dtype))
    w_p = w_p.reshape(K * HF_pad, G_pad)

    b = bias if bias is not None else jnp.zeros((G,), jnp.float32)
    b_p = jnp.zeros((1, G_pad), jnp.float32).at[0, :G].set(b.astype(jnp.float32))

    kernel = functools.partial(cheb_time_kernel, K=K, QB=qb, HF=HF_pad, G=G_pad)

    def _build(single_buffer_invariants):
        def inv_spec(shape):
            # Grid-invariant operands: double-buffering them is pure VMEM waste.
            if single_buffer_invariants:
                return pl.BlockSpec(shape, lambda *_: (0,) * len(shape),
                                    pipeline_mode=pl.Buffered(1))
            return pl.BlockSpec(shape, lambda *_: (0,) * len(shape))

        return pl.pallas_call(
            kernel,
            out_shape=jax.ShapeDtypeStruct((N_pad, Q_pad * G_pad), jnp.float32),
            grid_spec=pltpu.PrefetchScalarGridSpec(
                num_scalar_prefetch=0,
                grid=(steps,),
                in_specs=[
                    pl.BlockSpec((N_pad, qb * HF_pad), lambda i: (0, i)),  # x (streamed over Q)
                    inv_spec((N_pad, N_pad)),                              # lap
                    inv_spec((K * HF_pad, G_pad)),                         # weights
                    inv_spec((1, G_pad)),                                  # bias
                ],
                out_specs=pl.BlockSpec((N_pad, qb * G_pad), lambda i: (0, i)),
            ),
            compiler_params=pltpu.CompilerParams(
                dimension_semantics=("parallel",),
                vmem_limit_bytes=vmem_limit,
            ),
        )

    if hasattr(pl, "Buffered"):
        try:
            out2d = _build(True)(x_p, lap_p, w_p, b_p)
        except Exception:
            # Fallback if this JAX/Mosaic build rejects single-buffered inputs.
            out2d = _build(False)(x_p, lap_p, w_p, b_p)
    else:
        out2d = _build(False)(x_p, lap_p, w_p, b_p)

    out = out2d.reshape(N_pad, Q_pad, G_pad)[:N, :Q, :G]
    return jnp.transpose(out, (1, 0, 2))                      # -> (Q, N, G)


def cheb_time_conv_reference(x, lap_dense, weight, bias):
    """Pure-JAX f32 reference (dense form of the PyTorch forward)."""
    K = weight.shape[0]
    tx0 = x
    out = jnp.einsum('qnhf,hfg->qng', tx0, weight[0])
    tx1 = None
    if K > 1:
        tx1 = jnp.einsum('nm,qmhf->qnhf', lap_dense, tx0)
        out = out + jnp.einsum('qnhf,hfg->qng', tx1, weight[1])
    for k in range(2, K):
        tx2 = 2.0 * jnp.einsum('nm,qmhf->qnhf', lap_dense, tx1) - tx0
        out = out + jnp.einsum('qnhf,hfg->qng', tx2, weight[k])
        tx0, tx1 = tx1, tx2
    return out + bias


if __name__ == "__main__":
    # Small, deterministic problem: batch=4, nodes=16, horizon=8, in_ch=4, out_ch=8, K=3.
    Q, N, H, F, G, K = 4, 16, 8, 4, 8, 3

    key = jax.random.PRNGKey(0)
    kx, kw, kb, ke = jax.random.split(key, 4)

    stdv = 1.0 / math.sqrt(F * K)
    weight = jax.random.uniform(kw, (K, H, F, G), jnp.float32, -stdv, stdv)
    bias = jax.random.uniform(kb, (G,), jnp.float32, -stdv, stdv)
    x = jax.random.normal(kx, (Q, N, H, F), jnp.float32)

    # Ring graph in both directions + one self loop (exercises remove_self_loops).
    src = np.concatenate([np.arange(N), (np.arange(N) + 1) % N, np.array([3])])
    dst = np.concatenate([(np.arange(N) + 1) % N, np.arange(N), np.array([3])])
    edge_index = np.stack([src, dst]).astype(np.int32)
    edge_weight = np.asarray(
        jax.random.uniform(ke, (edge_index.shape[1],), jnp.float32, 0.5, 1.5))

    out = jax.block_until_ready(cheb_time_conv(x, edge_index, edge_weight, weight, bias))

    # ---- reference check (f32 dense) ----
    row, col = edge_index
    mask = row != col
    row_m, col_m, ew_m = row[mask], col[mask], edge_weight[mask]
    deg = jax.ops.segment_sum(jnp.ones((row_m.shape[0],), jnp.float32),
                              jnp.asarray(row_m), num_segments=N)
    dinv = jnp.where(deg > 0, deg ** -0.5, 0.0)
    lap_vals = -dinv[row_m] * jnp.asarray(ew_m) * dinv[col_m]
    lap_dense = jnp.zeros((N, N), jnp.float32).at[row_m, col_m].add(lap_vals)
    ref = cheb_time_conv_reference(x, lap_dense, weight, bias)

    # bf16 matmul operands with f32 accumulation -> looser tolerance than pure f32.
    # TODO(synk): re-validate the tolerance at production K (bf16 requantization of each
    #   Chebyshev term compounds with K); pass compute_dtype=jnp.float32 if needed.
    np.testing.assert_allclose(np.asarray(out), np.asarray(ref), rtol=3e-2, atol=3e-2)
    assert out.shape == (Q, N, G)
    print("KERNEL_OK")
</pallas_src>

<mosaic_0001>
module attributes {stable_mosaic.version = 11 : i64} {
  func.func @cheb_time_kernel(%arg0: i32, %arg1: memref<16x256xbf16, #tpu.memory_space<vmem>>, %arg2: memref<16x16xbf16, #tpu.memory_space<vmem>>, %arg3: memref<384x128xbf16, #tpu.memory_space<vmem>>, %arg4: memref<1x128xf32, #tpu.memory_space<vmem>>, %arg5: memref<16x256xf32, #tpu.memory_space<vmem>>) attributes {dimension_semantics = [#tpu.dimension_semantics<parallel>], iteration_bounds = array<i64: 2>, scalar_prefetch = 0 : i64, scratch_operands = 0 : i64, tpu.core_type = #tpu.core_type<tc>, window_params = [{transform_indices = @transform_0, window_bounds = array<i64: 16, 256>}, {pipeline_mode = #tpu.pipeline_mode<synchronous>, transform_indices = @transform_1, window_bounds = array<i64: 16, 16>}, {pipeline_mode = #tpu.pipeline_mode<synchronous>, transform_indices = @transform_2, window_bounds = array<i64: 384, 128>}, {pipeline_mode = #tpu.pipeline_mode<synchronous>, transform_indices = @transform_3, window_bounds = array<i64: 1, 128>}, {transform_indices = @transform_4, window_bounds = array<i64: 16, 256>}]} {
    %c0 = arith.constant 0 : index
    %c0_0 = arith.constant 0 : index
    %0 = vector.load %arg1[%c0, %c0_0] : memref<16x256xbf16, #tpu.memory_space<vmem>>, vector<16x256xbf16>
    %c0_1 = arith.constant 0 : index
    %c0_2 = arith.constant 0 : index
    %1 = vector.load %arg3[%c0_1, %c0_2] : memref<384x128xbf16, #tpu.memory_space<vmem>>, vector<128x128xbf16>
    %2 = vector.extract_strided_slice %0 {offsets = [0, 0], sizes = [16, 128], strides = [1, 1]} : vector<16x256xbf16> to vector<16x128xbf16>
    %cst = arith.constant dense<0.000000e+00> : vector<16x128xf32>
    %3 = tpu.matmul %2, %1, %cst {dimension_numbers = #tpu.dot_dimension_numbers<[1], [0], [0], [1], [0, 0, 1, 1], [], []>} : vector<16x128xbf16>, vector<128x128xbf16>, vector<16x128xf32> -> vector<16x128xf32>
    %c0_3 = arith.constant 0 : index
    %c0_4 = arith.constant 0 : index
    %4 = vector.load %arg4[%c0_3, %c0_4] : memref<1x128xf32, #tpu.memory_space<vmem>>, vector<1x128xf32>
    %5 = vector.broadcast %4 : vector<1x128xf32> to vector<16x128xf32>
    %6 = arith.addf %3, %5 : vector<16x128xf32>
    %c0_5 = arith.constant 0 : index
    %c0_6 = arith.constant 0 : index
    %7 = vector.load %arg5[%c0_5, %c0_6] : memref<16x256xf32, #tpu.memory_space<vmem>>, vector<16x128xf32>
    tpu.vector_store %arg5[%c0_5, %c0_6], %6 {strides = array<i32>} : memref<16x256xf32, #tpu.memory_space<vmem>>, vector<16x128xf32>,
    %8 = vector.extract_strided_slice %0 {offsets = [0, 128], sizes = [16, 128], strides = [1, 1]} : vector<16x256xbf16> to vector<16x128xbf16>
    %cst_7 = arith.constant dense<0.000000e+00> : vector<16x128xf32>
    %9 = tpu.matmul %8, %1, %cst_7 {dimension_numbers = #tpu.dot_dimension_numbers<[1], [0], [0], [1], [0, 0, 1, 1], [], []>} : vector<16x128xbf16>, vector<128x128xbf16>, vector<16x128xf32> -> vector<16x128xf32>
    %c0_8 = arith.constant 0 : index
    %c0_9 = arith.constant 0 : index
    %10 = vector.load %arg4[%c0_8, %c0_9] : memref<1x128xf32, #tpu.memory_space<vmem>>, vector<1x128xf32>
    %11 = vector.broadcast %10 : vector<1x128xf32> to vector<16x128xf32>
    %12 = arith.addf %9, %11 : vector<16x128xf32>
    %c0_10 = arith.constant 0 : index
    %c128 = arith.constant 128 : index
    %13 = vector.load %arg5[%c0_10, %c128] : memref<16x256xf32, #tpu.memory_space<vmem>>, vector<16x128xf32>
    tpu.vector_store %arg5[%c0_10, %c128], %12 {strides = array<i32>} : memref<16x256xf32, #tpu.memory_space<vmem>>, vector<16x128xf32>,
    %c0_11 = arith.constant 0 : index
    %c0_12 = arith.constant 0 : index
    %14 = vector.load %arg2[%c0_11, %c0_12] : memref<16x16xbf16, #tpu.memory_space<vmem>>, vector<16x16xbf16>
    %cst_13 = arith.constant dense<0.000000e+00> : vector<16x256xf32>
    %15 = tpu.matmul %14, %0, %cst_13 {dimension_numbers = #tpu.dot_dimension_numbers<[1], [0], [0], [1], [0, 0, 1, 1], [], []>} : vector<16x16xbf16>, vector<16x256xbf16>, vector<16x256xf32> -> vector<16x256xf32>
    %16 = arith.truncf %15 : vector<16x256xf32> to vector<16x256xbf16>
    %c128_14 = arith.constant 128 : index
    %c0_15 = arith.constant 0 : index
    %17 = vector.load %arg3[%c128_14, %c0_15] : memref<384x128xbf16, #tpu.memory_space<vmem>>, vector<128x128xbf16>
    %18 = vector.extract_strided_slice %16 {offsets = [0, 0], sizes = [16, 128], strides = [1, 1]} : vector<16x256xbf16> to vector<16x128xbf16>
    %cst_16 = arith.constant dense<0.000000e+00> : vector<16x128xf32>
    %19 = tpu.matmul %18, %17, %cst_16 {dimension_numbers = #tpu.dot_dimension_numbers<[1], [0], [0], [1], [0, 0, 1, 1], [], []>} : vector<16x128xbf16>, vector<128x128xbf16>, vector<16x128xf32> -> vector<16x128xf32>
    %c0_17 = arith.constant 0 : index
    %c0_18 = arith.constant 0 : index
    %20 = vector.load %arg5[%c0_17, %c0_18] : memref<16x256xf32, #tpu.memory_space<vmem>>, vector<16x128xf32>
    %21 = arith.addf %20, %19 : vector<16x128xf32>
    %c0_19 = arith.constant 0 : index
    %c0_20 = arith.constant 0 : index
    %22 = vector.load %arg5[%c0_19, %c0_20] : memref<16x256xf32, #tpu.memory_space<vmem>>, vector<16x128xf32>
    tpu.vector_store %arg5[%c0_19, %c0_20], %21 {strides = array<i32>} : memref<16x256xf32, #tpu.memory_space<vmem>>, vector<16x128xf32>,
    %23 = vector.extract_strided_slice %16 {offsets = [0, 128], sizes = [16, 128], strides = [1, 1]} : vector<16x256xbf16> to vector<16x128xbf16>
    %cst_21 = arith.constant dense<0.000000e+00> : vector<16x128xf32>
    %24 = tpu.matmul %23, %17, %cst_21 {dimension_numbers = #tpu.dot_dimension_numbers<[1], [0], [0], [1], [0, 0, 1, 1], [], []>} : vector<16x128xbf16>, vector<128x128xbf16>, vector<16x128xf32> -> vector<16x128xf32>
    %c0_22 = arith.constant 0 : index
    %c128_23 = arith.constant 128 : index
    %25 = vector.load %arg5[%c0_22, %c128_23] : memref<16x256xf32, #tpu.memory_space<vmem>>, vector<16x128xf32>
    %26 = arith.addf %25, %24 : vector<16x128xf32>
    %c0_24 = arith.constant 0 : index
    %c128_25 = arith.constant 128 : index
    %27 = vector.load %arg5[%c0_24, %c128_25] : memref<16x256xf32, #tpu.memory_space<vmem>>, vector<16x128xf32>
    tpu.vector_store %arg5[%c0_24, %c128_25], %26 {strides = array<i32>} : memref<16x256xf32, #tpu.memory_space<vmem>>, vector<16x128xf32>,
    %28 = arith.extf %0 : vector<16x256xbf16> to vector<16x256xf32>
    %cst_26 = arith.constant dense<0.000000e+00> : vector<16x256xf32>
    %29 = tpu.matmul %14, %16, %cst_26 {dimension_numbers = #tpu.dot_dimension_numbers<[1], [0], [0], [1], [0, 0, 1, 1], [], []>} : vector<16x16xbf16>, vector<16x256xbf16>, vector<16x256xf32> -> vector<16x256xf32>
    %cst_27 = arith.constant 2.000000e+00 : f32
    %30 = vector.broadcast %cst_27 : f32 to vector<16x256xf32>
    %31 = arith.mulf %30, %29 : vector<16x256xf32>
    %32 = arith.subf %31, %28 : vector<16x256xf32>
    %33 = arith.truncf %32 : vector<16x256xf32> to vector<16x256xbf16>
    %c256 = arith.constant 256 : index
    %c0_28 = arith.constant 0 : index
    %34 = vector.load %arg3[%c256, %c0_28] : memref<384x128xbf16, #tpu.memory_space<vmem>>, vector<128x128xbf16>
    %35 = vector.extract_strided_slice %33 {offsets = [0, 0], sizes = [16, 128], strides = [1, 1]} : vector<16x256xbf16> to vector<16x128xbf16>
    %cst_29 = arith.constant dense<0.000000e+00> : vector<16x128xf32>
    %36 = tpu.matmul %35, %34, %cst_29 {dimension_numbers = #tpu.dot_dimension_numbers<[1], [0], [0], [1], [0, 0, 1, 1], [], []>} : vector<16x128xbf16>, vector<128x128xbf16>, vector<16x128xf32> -> vector<16x128xf32>
    %c0_30 = arith.constant 0 : index
    %c0_31 = arith.constant 0 : index
    %37 = vector.load %arg5[%c0_30, %c0_31] : memref<16x256xf32, #tpu.memory_space<vmem>>, vector<16x128xf32>
    %38 = arith.addf %37, %36 : vector<16x128xf32>
    %c0_32 = arith.constant 0 : index
    %c0_33 = arith.constant 0 : index
    %39 = vector.load %arg5[%c0_32, %c0_33] : memref<16x256xf32, #tpu.memory_space<vmem>>, vector<16x128xf32>
    tpu.vector_store %arg5[%c0_32, %c0_33], %38 {strides = array<i32>} : memref<16x256xf32, #tpu.memory_space<vmem>>, vector<16x128xf32>,
    %40 = vector.extract_strided_slice %33 {offsets = [0, 128], sizes = [16, 128], strides = [1, 1]} : vector<16x256xbf16> to vector<16x128xbf16>
    %cst_34 = arith.constant dense<0.000000e+00> : vector<16x128xf32>
    %41 = tpu.matmul %40, %34, %cst_34 {dimension_numbers = #tpu.dot_dimension_numbers<[1], [0], [0], [1], [0, 0, 1, 1], [], []>} : vector<16x128xbf16>, vector<128x128xbf16>, vector<16x128xf32> -> vector<16x128xf32>
    %c0_35 = arith.constant 0 : index
    %c128_36 = arith.constant 128 : index
    %42 = vector.load %arg5[%c0_35, %c128_36] : memref<16x256xf32, #tpu.memory_space<vmem>>, vector<16x128xf32>
    %43 = arith.addf %42, %41 : vector<16x128xf32>
    %c0_37 = arith.constant 0 : index
    %c128_38 = arith.constant 128 : index
    %44 = vector.load %arg5[%c0_37, %c128_38] : memref<16x256xf32, #tpu.memory_space<vmem>>, vector<16x128xf32>
    tpu.vector_store %arg5[%c0_37, %c128_38], %43 {strides = array<i32>} : memref<16x256xf32, #tpu.memory_space<vmem>>, vector<16x128xf32>,
    return
  }
  func.func @transform_0(%arg0: i32) -> (i32, i32) {
    %c0_i32 = arith.constant 0 : i32
    %c0_i32_0 = arith.constant 0 : i32
    return %c0_i32, %arg0 : i32, i32
  }
  func.func @transform_1(%arg0: i32) -> (i32, i32) {
    %c0_i32 = arith.constant 0 : i32
    %c0_i32_0 = arith.constant 0 : i32
    %c0_i32_1 = arith.constant 0 : i32
    return %c0_i32, %c0_i32_0 : i32, i32
  }
  func.func @transform_2(%arg0: i32) -> (i32, i32) {
    %c0_i32 = arith.constant 0 : i32
    %c0_i32_0 = arith.constant 0 : i32
    %c0_i32_1 = arith.constant 0 : i32
    return %c0_i32, %c0_i32_0 : i32, i32
  }
  func.func @transform_3(%arg0: i32) -> (i32, i32) {
    %c0_i32 = arith.constant 0 : i32
    %c0_i32_0 = arith.constant 0 : i32
    %c0_i32_1 = arith.constant 0 : i32
    return %c0_i32, %c0_i32_0 : i32, i32
  }
  func.func @transform_4(%arg0: i32) -> (i32, i32) {
    %c0_i32 = arith.constant 0 : i32
    %c0_i32_0 = arith.constant 0 : i32
    return %c0_i32, %arg0 : i32, i32
  }
}

module attributes {stable_mosaic.version = 11 : i64} {
  func.func @cheb_time_kernel(%arg0: i32, %arg1: memref<16x256xbf16, #tpu.memory_space<vmem>>, %arg2: memref<16x16xbf16, #tpu.memory_space<vmem>>, %arg3: memref<384x128xbf16, #tpu.memory_space<vmem>>, %arg4: memref<1x128xf32, #tpu.memory_space<vmem>>, %arg5: memref<16x256xf32, #tpu.memory_space<vmem>>) attributes {dimension_semantics = [#tpu.dimension_semantics<parallel>], iteration_bounds = array<i64: 2>, scalar_prefetch = 0 : i64, scratch_operands = 0 : i64, tpu.core_type = #tpu.core_type<tc>, window_params = [{transform_indices = @transform_0, window_bounds = array<i64: 16, 256>}, {pipeline_mode = #tpu.pipeline_mode<synchronous>, transform_indices = @transform_1, window_bounds = array<i64: 16, 16>}, {pipeline_mode = #tpu.pipeline_mode<synchronous>, transform_indices = @transform_2, window_bounds = array<i64: 384, 128>}, {pipeline_mode = #tpu.pipeline_mode<synchronous>, transform_indices = @transform_3, window_bounds = array<i64: 1, 128>}, {transform_indices = @transform_4, window_bounds = array<i64: 16, 256>}]} {
    %c0 = arith.constant 0 : index
    %c0_0 = arith.constant 0 : index
    %0 = vector.load %arg1[%c0, %c0_0] : memref<16x256xbf16, #tpu.memory_space<vmem>>, vector<16x256xbf16>
    %c0_1 = arith.constant 0 : index
    %c0_2 = arith.constant 0 : index
    %1 = vector.load %arg3[%c0_1, %c0_2] : memref<384x128xbf16, #tpu.memory_space<vmem>>, vector<128x128xbf16>
    %2 = vector.extract_strided_slice %0 {offsets = [0, 0], sizes = [16, 128], strides = [1, 1]} : vector<16x256xbf16> to vector<16x128xbf16>
    %cst = arith.constant dense<0.000000e+00> : vector<16x128xf32>
    %3 = tpu.matmul %2, %1, %cst {dimension_numbers = #tpu.dot_dimension_numbers<[1], [0], [0], [1], [0, 0, 1, 1], [], []>} : vector<16x128xbf16>, vector<128x128xbf16>, vector<16x128xf32> -> vector<16x128xf32>
    %c0_3 = arith.constant 0 : index
    %c0_4 = arith.constant 0 : index
    %4 = vector.load %arg4[%c0_3, %c0_4] : memref<1x128xf32, #tpu.memory_space<vmem>>, vector<1x128xf32>
    %5 = vector.broadcast %4 : vector<1x128xf32> to vector<16x128xf32>
    %6 = arith.addf %3, %5 : vector<16x128xf32>
    %c0_5 = arith.constant 0 : index
    %c0_6 = arith.constant 0 : index
    %7 = vector.load %arg5[%c0_5, %c0_6] : memref<16x256xf32, #tpu.memory_space<vmem>>, vector<16x128xf32>
    tpu.vector_store %arg5[%c0_5, %c0_6], %6 {strides = array<i32>} : memref<16x256xf32, #tpu.memory_space<vmem>>, vector<16x128xf32>,
    %8 = vector.extract_strided_slice %0 {offsets = [0, 128], sizes = [16, 128], strides = [1, 1]} : vector<16x256xbf16> to vector<16x128xbf16>
    %cst_7 = arith.constant dense<0.000000e+00> : vector<16x128xf32>
    %9 = tpu.matmul %8, %1, %cst_7 {dimension_numbers = #tpu.dot_dimension_numbers<[1], [0], [0], [1], [0, 0, 1, 1], [], []>} : vector<16x128xbf16>, vector<128x128xbf16>, vector<16x128xf32> -> vector<16x128xf32>
    %c0_8 = arith.constant 0 : index
    %c0_9 = arith.constant 0 : index
    %10 = vector.load %arg4[%c0_8, %c0_9] : memref<1x128xf32, #tpu.memory_space<vmem>>, vector<1x128xf32>
    %11 = vector.broadcast %10 : vector<1x128xf32> to vector<16x128xf32>
    %12 = arith.addf %9, %11 : vector<16x128xf32>
    %c0_10 = arith.constant 0 : index
    %c128 = arith.constant 128 : index
    %13 = vector.load %arg5[%c0_10, %c128] : memref<16x256xf32, #tpu.memory_space<vmem>>, vector<16x128xf32>
    tpu.vector_store %arg5[%c0_10, %c128], %12 {strides = array<i32>} : memref<16x256xf32, #tpu.memory_space<vmem>>, vector<16x128xf32>,
    %c0_11 = arith.constant 0 : index
    %c0_12 = arith.constant 0 : index
    %14 = vector.load %arg2[%c0_11, %c0_12] : memref<16x16xbf16, #tpu.memory_space<vmem>>, vector<16x16xbf16>
    %cst_13 = arith.constant dense<0.000000e+00> : vector<16x256xf32>
    %15 = tpu.matmul %14, %0, %cst_13 {dimension_numbers = #tpu.dot_dimension_numbers<[1], [0], [0], [1], [0, 0, 1, 1], [], []>} : vector<16x16xbf16>, vector<16x256xbf16>, vector<16x256xf32> -> vector<16x256xf32>
    %16 = arith.truncf %15 : vector<16x256xf32> to vector<16x256xbf16>
    %c128_14 = arith.constant 128 : index
    %c0_15 = arith.constant 0 : index
    %17 = vector.load %arg3[%c128_14, %c0_15] : memref<384x128xbf16, #tpu.memory_space<vmem>>, vector<128x128xbf16>
    %18 = vector.extract_strided_slice %16 {offsets = [0, 0], sizes = [16, 128], strides = [1, 1]} : vector<16x256xbf16> to vector<16x128xbf16>
    %cst_16 = arith.constant dense<0.000000e+00> : vector<16x128xf32>
    %19 = tpu.matmul %18, %17, %cst_16 {dimension_numbers = #tpu.dot_dimension_numbers<[1], [0], [0], [1], [0, 0, 1, 1], [], []>} : vector<16x128xbf16>, vector<128x128xbf16>, vector<16x128xf32> -> vector<16x128xf32>
    %c0_17 = arith.constant 0 : index
    %c0_18 = arith.constant 0 : index
    %20 = vector.load %arg5[%c0_17, %c0_18] : memref<16x256xf32, #tpu.memory_space<vmem>>, vector<16x128xf32>
    %21 = arith.addf %20, %19 : vector<16x128xf32>
    %c0_19 = arith.constant 0 : index
    %c0_20 = arith.constant 0 : index
    %22 = vector.load %arg5[%c0_19, %c0_20] : memref<16x256xf32, #tpu.memory_space<vmem>>, vector<16x128xf32>
    tpu.vector_store %arg5[%c0_19, %c0_20], %21 {strides = array<i32>} : memref<16x256xf32, #tpu.memory_space<vmem>>, vector<16x128xf32>,
    %23 = vector.extract_strided_slice %16 {offsets = [0, 128], sizes = [16, 128], strides = [1, 1]} : vector<16x256xbf16> to vector<16x128xbf16>
    %cst_21 = arith.constant dense<0.000000e+00> : vector<16x128xf32>
    %24 = tpu.matmul %23, %17, %cst_21 {dimension_numbers = #tpu.dot_dimension_numbers<[1], [0], [0], [1], [0, 0, 1, 1], [], []>} : vector<16x128xbf16>, vector<128x128xbf16>, vector<16x128xf32> -> vector<16x128xf32>
    %c0_22 = arith.constant 0 : index
    %c128_23 = arith.constant 128 : index
    %25 = vector.load %arg5[%c0_22, %c128_23] : memref<16x256xf32, #tpu.memory_space<vmem>>, vector<16x128xf32>
    %26 = arith.addf %25, %24 : vector<16x128xf32>
    %c0_24 = arith.constant 0 : index
    %c128_25 = arith.constant 128 : index
    %27 = vector.load %arg5[%c0_24, %c128_25] : memref<16x256xf32, #tpu.memory_space<vmem>>, vector<16x128xf32>
    tpu.vector_store %arg5[%c0_24, %c128_25], %26 {strides = array<i32>} : memref<16x256xf32, #tpu.memory_space<vmem>>, vector<16x128xf32>,
    %28 = arith.extf %0 : vector<16x256xbf16> to vector<16x256xf32>
    %cst_26 = arith.constant dense<0.000000e+00> : vector<16x256xf32>
    %29 = tpu.matmul %14, %16, %cst_26 {dimension_numbers = #tpu.dot_dimension_numbers<[1], [0], [0], [1], [0, 0, 1, 1], [], []>} : vector<16x16xbf16>, vector<16x256xbf16>, vector<16x256xf32> -> vector<16x256xf32>
    %cst_27 = arith.constant 2.000000e+00 : f32
    %30 = vector.broadcast %cst_27 : f32 to vector<16x256xf32>
    %31 = arith.mulf %30, %29 : vector<16x256xf32>
    %32 = arith.subf %31, %28 : vector<16x256xf32>
    %33 = arith.truncf %32 : vector<16x256xf32> to vector<16x256xbf16>
    %c256 = arith.constant 256 : index
    %c0_28 = arith.constant 0 : index
    %34 = vector.load %arg3[%c256, %c0_28] : memref<384x128xbf16, #tpu.memory_space<vmem>>, vector<128x128xbf16>
    %35 = vector.extract_strided_slice %33 {offsets = [0, 0], sizes = [16, 128], strides = [1, 1]} : vector<16x256xbf16> to vector<16x128xbf16>
    %cst_29 = arith.constant dense<0.000000e+00> : vector<16x128xf32>
    %36 = tpu.matmul %35, %34, %cst_29 {dimension_numbers = #tpu.dot_dimension_numbers<[1], [0], [0], [1], [0, 0, 1, 1], [], []>} : vector<16x128xbf16>, vector<128x128xbf16>, vector<16x128xf32> -> vector<16x128xf32>
    %c0_30 = arith.constant 0 : index
    %c0_31 = arith.constant 0 : index
    %37 = vector.load %arg5[%c0_30, %c0_31] : memref<16x256xf32, #tpu.memory_space<vmem>>, vector<16x128xf32>
    %38 = arith.addf %37, %36 : vector<16x128xf32>
    %c0_32 = arith.constant 0 : index
    %c0_33 = arith.constant 0 : index
    %39 = vector.load %arg5[%c0_32, %c0_33] : memref<16x256xf32, #tpu.memory_space<vmem>>, vector<16x128xf32>
    tpu.vector_store %arg5[%c0_32, %c0_33], %38 {strides = array<i32>} : memref<16x256xf32, #tpu.memory_space<vmem>>, vector<16x128xf32>,
    %40 = vector.extract_strided_slice %33 {offsets = [0, 128], sizes = [16, 128], strides = [1, 1]} : vector<16x256xbf16> to vector<16x128xbf16>
    %cst_34 = arith.constant dense<0.000000e+00> : vector<16x128xf32>
    %41 = tpu.matmul %40, %34, %cst_34 {dimension_numbers = #tpu.dot_dimension_numbers<[1], [0], [0], [1], [0, 0, 1, 1], [], []>} : vector<16x128xbf16>, vector<128x128xbf16>, vector<16x128xf32> -> vector<16x128xf32>
    %c0_35 = arith.constant 0 : index
    %c128_36 = arith.constant 128 : index
    %42 = vector.load %arg5[%c0_35, %c128_36] : memref<16x256xf32, #tpu.memory_space<vmem>>, vector<16x128xf32>
    %43 = arith.addf %42, %41 : vector<16x128xf32>
    %c0_37 = arith.constant 0 : index
    %c128_38 = arith.constant 128 : index
    %44 = vector.load %arg5[%c0_37, %c128_38] : memref<16x256xf32, #tpu.memory_space<vmem>>, vector<16x128xf32>
    tpu.vector_store %arg5[%c0_37, %c128_38], %43 {strides = array<i32>} : memref<16x256xf32, #tpu.memory_space<vmem>>, vector<16x128xf32>,
    return
  }
  func.func @transform_0(%arg0: i32) -> (i32, i32) {
    %c0_i32 = arith.constant 0 : i32
    %c0_i32_0 = arith.constant 0 : i32
    return %c0_i32, %arg0 : i32, i32
  }
  func.func @transform_1(%arg0: i32) -> (i32, i32) {
    %c0_i32 = arith.constant 0 : i32
    %c0_i32_0 = arith.constant 0 : i32
    %c0_i32_1 = arith.constant 0 : i32
    return %c0_i32, %c0_i32_0 : i32, i32
  }
  func.func @transform_2(%arg0: i32) -> (i32, i32) {
    %c0_i32 = arith.constant 0 : i32
    %c0_i32_0 = arith.constant 0 : i32
    %c0_i32_1 = arith.constant 0 : i32
    return %c0_i32, %c0_i32_0 : i32, i32
  }
  func.func @transform_3(%arg0: i32) -> (i32, i32) {
    %c0_i32 = arith.constant 0 : i32
    %c0_i32_0 = arith.constant 0 : i32
    %c0_i32_1 = arith.constant 0 : i32
    return %c0_i32, %c0_i32_0 : i32, i32
  }
  func.func @transform_4(%arg0: i32) -> (i32, i32) {
    %c0_i32 = arith.constant 0 : i32
    %c0_i32_0 = arith.constant 0 : i32
    return %c0_i32, %arg0 : i32, i32
  }
}

</mosaic_0001>

<bundles_post_ra>
// kernel: tpu_custom_call.1
= control target key start
LH: loop header
LB: loop body
LE: loop exit
PB: predicated region body
PF: predicated region fallthrough
CT: control target
= control target key end

     0   :  { %9 = vsyncpa [#allocation3], 0  ;;  %s1394_s0 = inlined_call_operand.hbm [shape: bf16[16,512], index: 0, kind: input, shape index: {}]   ;;  %s1395_s1 = inlined_call_operand.hbm [shape: bf16[16,16], index: 1, kind: input, shape index: {}]   ;;  %s1396_s2 = inlined_call_operand.hbm [shape: bf16[384,128], index: 2, kind: input, shape index: {}]   ;;  %s1397_s3 = inlined_call_operand.vmem [shape: f32[1,128], index: 3, kind: input, shape index: {}]   ;;  %s1398_s4 = inlined_call_operand.hbm [shape: f32[16,512], index: 4, kind: output, shape index: {}]  }
   0x1   :  { %11 = vsyncpa [#allocation3 + $0x1], 0 }
   0x2   :  { %12 = vsyncpa [#allocation6], 0 }
   0x3   :  { %13 = vsyncpa [#allocation4], 0 }
   0x4   :  { %15 = vsyncpa [#allocation4 + $0x1], 0  ;;  %s1222_s15 = smov 0   ;;  %s1224_s16 = smov 0  }
   0x5   :  { %s1226_s17 = smov 0   ;;  %s1228_s18 = smov 0  }
   0x6 LB: > { %s1243_s19 = sadd.s32 4294967295, %s1185_s18   ;;  %s789_s20 = sadd.s32 4294967294, %s1185_s18   ;;  %s1185_s18 = sphi %s1228_s18, %s1408_s18   ;;  %s1181_s17 = sphi %s1226_s17, %s1407_s17   ;;  %s1177_s16 = sphi %s1224_s16, %s1406_s16   ;;  %s1173_s15 = sphi %s1222_s15, %s1405_s15  }
   0x7   : > { %p41_p0 = scmp.ne.s32.totalorder %s1177_s16, %s1173_s15  ;;  %p42_p1 = scmp.eq.s32.totalorder %s1243_s19, 0 }
   0x8   : > { %p128_p2 = scmp.eq.s32.totalorder %s1243_s19, 1  ;;  %p134_p3 = scmp.eq.s32.totalorder %s789_s20, 1 }
   0x9   : > { %p1252_p4 = por %p42_p1, %p41_p0  ;;  %p790_p5 = scmp.ge.s32.totalorder %s1185_s18, 1 }
   0xa   : > { %p1257_p6 = por %p134_p3, %p41_p0  ;;  %p141_p7 = scmp.lt.s32.totalorder %s1185_s18, 3 }
   0xb   : > { %s152_s25 = sshll.u32 %s1395_s1, 4  ;;  %s1187_s27 = smov [#allocation5]   ;;  %s153_s25 = int_to_ptr.hbm [resolvable:$true] %s152_s25 }
   0xc   : > { %p1265_p8 = pnand %p790_p5, %p141_p7  ;;  %s154_s28 = sshll.u32 %s1187_s27, 4  ;;  %s155_s28 = int_to_ptr.vmem [resolvable:$true] %s154_s28 }
   0xd   : > { %s166_s5 = sshll.u32 %s1396_s2, 4  ;;  %s1188_s6 = smov 64   ;;  %s167_s5 = int_to_ptr.hbm [resolvable:$true] %s166_s5 }
   0xe   : > { %p960_p9 = pneg %p1265_p8  ;;  %s1189_s7 = smov 4  }
   0xf   : > { %s1190_s8 = smov [#allocation7]   ;;  %s1278_s10 = sadd.s32 1, %s1185_s18  }
  0x10   : > { %p961_p10 = pnand %p960_p9, %p42_p1  ;;  %s168_s9 = sshll.u32 %s1190_s8, 4  ;;  %s169_s9 = int_to_ptr.vmem [resolvable:$true] %s168_s9 }
  0x11   : > { %s28_s11 = sadd.s32 1, %s1181_s17  ;;  %s25_s12 = ssub.s32 %s1185_s18, %s1278_s10 }
  0x12   : > { %963 = dma.hbm_to_vmem [thread:$0]  (!%p961_p10), %s153_s25, 128, %s155_s28, [#allocation6], %s1188_s6, %s1188_s6, %s1189_s7  }
  0x13   : > { %966 = dma.hbm_to_vmem [thread:$0]  (!%p961_p10), %s167_s5, 3072, %s169_s9, [#allocation6], %s1188_s6, %s1188_s6, %s1189_s7  }
  0x14   : > { %p35_p12 = scmp.ne.s32.totalorder %s1181_s17, %s1177_s16  ;;  %p26_p13 = scmp.eq.s32.totalorder %s25_s12, 0 }
  0x15   : > { %p36_p0 = scmp.eq.s32.totalorder %s1185_s18, 0  ;;  %p977_p5 = scmp.lt.s32.totalorder %s1185_s18, 2 }
  0x16   : > { %p1288_p3 = por %p128_p2, %p35_p12  ;;  %s185_s20 = sand.u32 1, %s1181_s17  }
  0x17   : > { %s1294_s14 = scalar_select %p26_p13, %s1181_s17, %s28_s11  }
  0x18   : > { %p37_p7 = por %p36_p0, %p35_p12  ;;  %s794_s23 = sshll.u32 %s185_s20, 4 }
  0x19   : > { %s919_s24 = sshll.u32 %s1185_s18, 3  ;;  %s189_s29 = scalar_lea.vmem [#allocation2], %s794_s23 }
  0x1a   : > { %s194_s28 = scalar_lea.hbm %s1394_s0, %s919_s24  ;;  %s197_s30 = sshll.u32 %s189_s29, 4  ;;  %s198_s30 = int_to_ptr.vmem [resolvable:$true] %s197_s30 }
  0x1b   : > { %s195_s5 = sshll.u32 %s194_s28, 4  ;;  %p1301_p2 = pnand %p977_p5, %p37_p7  ;;  %s196_s5 = int_to_ptr.hbm [resolvable:$true] %s195_s5 }
  0x1c   : > { %s186_s7 = scalar_lea.sflag [#allocation3], %s185_s20  ;;  %s1085_s8 = sshra.s32 %s196_s5, 4  ;;  %s1086_s8 = int_to_ptr.hbm [resolvable:$true] %s1085_s8 }
  0x1d   : > { %s1087_s9 = scalar_lea.hbm %s1086_s8, 16  ;;  %p1089_p10 = pneg %p1301_p2 }
  0x1e   : > { %p1088_p9 = scmp.ne.s32.totalorder %s1086_s8, %s1087_s9  ;;  %s1092_s23 = scalar_lea.hbm %s1394_s0, 32 }
  0x1f   : > { %p1093_p0 = scmp.lt.s32.totalorder %s1086_s8, %s1394_s0  ;;  %p1094_p5 = scmp.lt.s32.totalorder %s1092_s23, %s1087_s9 }
  0x20   : > { %p1090_p12 = pnand %p1089_p10, %p1088_p9 }
  0x21   : > { %p1095_p7 = por %p1094_p5, %p1093_p0 }
  0x22   : > { %p1091_p13 = pneg %p1090_p12 }
  0x24   : > { %p1096_p11 = pnand %p1095_p7, %p1091_p13 }
  0x26   : > { %1099 = shalt.err (!%p1096_p11)
}
  0x27   : > { %s1191_s20 = smov 256   ;;  %s1192_s27 = smov 128  }
  0x28   : > { %s1193_s28 = smov 8   ;;  %209 = sbr.rel (%p1265_p8) target bundleno = 532 (0x214), region = 36 }
  0x29   : > { %970 = dma.hbm_to_vmem [thread:$0]  (!%p1301_p2), %s196_s5, 256, %s198_s30, %s186_s7, %s1191_s20, %s1192_s27, %s1193_s28  }
  0x2a   : > { %s1318_s29 = sand.u32 (!%p1265_p8), 1, %s1177_s16  }
  0x2b   : > { %s798_s8 = sshll.u32 (!%p1265_p8), %s1318_s29, 4  ;;  %s212_s9 = scalar_lea.sflag (!%p1265_p8), [#allocation3], %s1318_s29 }
  0x2c   : > { %s1322_s11 = scalar_lea.vmem (!%p1265_p8), [#allocation2], %s798_s8 }
  0x2d   : > { %1160 = dma.done.wait (%p1252_p4), %s212_s9, 256  }
  0x2e   : > { %1162 = vsyncadd (%p1252_p4), %s212_s9, 4294967040 }
  0x2f   : > { %1164 = dma.done.wait (%p42_p1), [#allocation6], 3200  }
  0x30   : > { %1166 = vsyncadd (%p42_p1), [#allocation6], 4294964096  ;;  %v929_v0 = vld [vmem:[#allocation7 + $0x38] sm:$0xff]  ;;  %v928_v1 = vld [vmem:[#allocation7 + $0x30] sm:$0xff]  ;;  %vm377_vm0 = vcmask 130048   ;;  %s801_s6 = sshll.u32 %s1318_s29, 5 }
  0x31   : > { %330 = vmatpush.bf16.msra.mxu0 %v929_v0  ;;  %354 = vmatpush.bf16.msra.mxu1 %v929_v0  ;;  %v927_v2 = vld [vmem:[#allocation7 + $0x28] sm:$0xff]  ;;  %v926_v3 = vld [vmem:[#allocation7 + $0x20] sm:$0xff]  ;;  %v925_v4 = vld [vmem:[#allocation7 + $0x18] sm:$0xff]  ;;  %s947_s7 = sshll.u32 %s1243_s19, 4  ;;  %s250_s12 = scalar_lea.vmem [#allocation8], %s801_s6 }
  0x32   : > { %v924_v5 = vld [vmem:[#allocation7 + $0x10] sm:$0xff]  ;;  %v923_v6 = vld [vmem:[#allocation7 + $0x8] sm:$0xff]  ;;  %v922_v7 = vld [vmem:[#allocation7] sm:$0xff]  ;;  %s693_s25 = scalar_lea.hbm %s1398_s4, %s947_s7  ;;  %s694_s20 = sshll.u32 %s250_s12, 4  ;;  %s695_s20 = int_to_ptr.vmem [resolvable:$true] %s694_s20 }
  0x33   : > { %v804_v8 = vld [vmem:[%s1322_s11] sm:$0xf]  ;;  %v921_v9 = vld [vmem:[%s1322_s11 + $0x4] sm:$0xf0]  ;;  %v920_v10 = vld [vmem:[%s1322_s11 + $0x4] sm:$0xf] }
  0x34   : > { %v838_v11 = vld [vmem:[%s1322_s11 + $0x8] sm:$0xf0]  ;;  %v805_v12 = vor.u32 %v921_v9, %v804_v8  ;;  %v930_v14 = vld [vmem:[#allocation5] sm:$0xff]  ;;  %v936_v17 = vld [vmem:[#allocation7 + $0x68] sm:$0xff]  ;;  %s696_s27 = sshll.u32 %s693_s25, 4  ;;  %s682_s19 = scalar_lea.sflag [#allocation4], %s1318_s29  ;;  %s697_s27 = int_to_ptr.hbm [resolvable:$true] %s696_s27 }
  0x35   : > { %331 = vmatpush.bf16.msra.mxu0 %v928_v1  ;;  %355 = vmatpush.bf16.msra.mxu1 %v928_v1  ;;  %v841_v13 = vor.u32 %v920_v10, %v838_v11  ;;  %v938_v15 = vld [vmem:[#allocation7 + $0x78] sm:$0xff]  ;;  %v937_v16 = vld [vmem:[#allocation7 + $0x70] sm:$0xff]  ;;  %v935_v18 = vld [vmem:[#allocation7 + $0x60] sm:$0xff]  ;;  %s1129_s28 = sshra.s32 %s697_s27, 4  ;;  %s1135_s21 = scalar_lea.hbm %s1398_s4, 64  ;;  %s1130_s28 = int_to_ptr.hbm [resolvable:$true] %s1129_s28 }
  0x36   : > { %481 = vmatpush.bf16.msra.mxu2 %v938_v15  ;;  %505 = vmatpush.bf16.msra.mxu3 %v938_v15  ;;  %v934_v19 = vld [vmem:[#allocation7 + $0x58] sm:$0xff]  ;;  %v933_v20 = vld [vmem:[#allocation7 + $0x50] sm:$0xff]  ;;  %v932_v21 = vld [vmem:[#allocation7 + $0x48] sm:$0xff]  ;;  %s1131_s8 = scalar_lea.hbm %s1130_s28, 32  ;;  %p1136_p11 = scmp.lt.s32.totalorder %s1130_s28, %s1398_s4 }
  0x37   : > { %v931_v22 = vld [vmem:[#allocation7 + $0x40] sm:$0xff]  ;;  %v946_v25 = vld [vmem:[#allocation7 + $0xb8] sm:$0xff]  ;;  %v945_v26 = vld [vmem:[#allocation7 + $0xb0] sm:$0xff]  ;;  %p1132_p1 = scmp.ne.s32.totalorder %s1130_s28, %s1131_s8  ;;  %p1137_p2 = scmp.lt.s32.totalorder %s1135_s21, %s1131_s8 }
  0x38   : > { %v944_v29 = vld [vmem:[#allocation7 + $0xa8] sm:$0xff]  ;;  %v943_v42 = vld [vmem:[#allocation7 + $0xa0] sm:$0xff]  ;;  %v942_v43 = vld [vmem:[#allocation7 + $0x98] sm:$0xff] }
  0x39   : > { %332 = vmatpush.bf16.msra.mxu0 %v927_v2  ;;  %356 = vmatpush.bf16.msra.mxu1 %v927_v2  ;;  %v941_v44 = vld [vmem:[#allocation7 + $0x90] sm:$0xff]  ;;  %v940_v45 = vld [vmem:[#allocation7 + $0x88] sm:$0xff]  ;;  %v939_v46 = vld [vmem:[#allocation7 + $0x80] sm:$0xff]  ;;  %p1133_p4 = pnand %p1132_p1, %p1288_p3  ;;  %p1138_p9 = por %p1137_p2, %p1136_p11 }
  0x3a   : > { %482 = vmatpush.bf16.msra.mxu2 %v937_v16  ;;  %506 = vmatpush.bf16.msra.mxu3 %v937_v16  ;;  %v254_v47 = vld [vmem:[%s1322_s11] sm:$0xff]  ;;  %v255_v54 = vld [vmem:[%s1322_s11 + $0x8] sm:$0xff] }
  0x3b   : > { %v525_v50 = vunpack.c.l.bf16 %v254_v47  ;;  %v526_v52 = vunpack.c.h.bf16 %v254_v47  ;;  %v527_v57 = vunpack.c.l.bf16 %v255_v54  ;;  %v528_v58 = vunpack.c.h.bf16 %v255_v54  ;;  %p1134_p8 = pneg %p1133_p4 }
  0x3d   : > { %333 = vmatpush.bf16.msra.mxu0 %v926_v3  ;;  %357 = vmatpush.bf16.msra.mxu1 %v926_v3  ;;  %p1139_p10 = pnand %p1138_p9, %p1134_p8 }
  0x3e   : > { %483 = vmatpush.bf16.msra.mxu2 %v936_v17  ;;  %507 = vmatpush.bf16.msra.mxu3 %v936_v17 }
  0x41   : > { %334 = vmatpush.bf16.msra.mxu0 %v925_v4  ;;  %358 = vmatpush.bf16.msra.mxu1 %v925_v4 }
  0x42   : > { %484 = vmatpush.bf16.msra.mxu2 %v935_v18  ;;  %508 = vmatpush.bf16.msra.mxu3 %v935_v18 }
  0x45   : > { %335 = vmatpush.bf16.msra.mxu0 %v924_v5  ;;  %359 = vmatpush.bf16.msra.mxu1 %v924_v5 }
  0x46   : > { %485 = vmatpush.bf16.msra.mxu2 %v934_v19  ;;  %509 = vmatpush.bf16.msra.mxu3 %v934_v19 }
  0x49   : > { %336 = vmatpush.bf16.msra.mxu0 %v923_v6  ;;  %360 = vmatpush.bf16.msra.mxu1 %v923_v6 }
  0x4a   : > { %486 = vmatpush.bf16.msra.mxu2 %v933_v20  ;;  %510 = vmatpush.bf16.msra.mxu3 %v933_v20 }
  0x4d   : > { %337 = vmatpush.bf16.msra.mxu0 %v922_v7  ;;  %361 = vmatpush.bf16.msra.mxu1 %v922_v7 }
  0x4e   : > { %487 = vmatpush.bf16.msra.mxu2 %v932_v21  ;;  %511 = vmatpush.bf16.msra.mxu3 %v932_v21 }
  0x50   : > { %338 = vmatmul.bf16.vlgmr.msra.gmra.mxu0 %v805_v12  ;;  %362 = vmatmul.bf16.vlgmr.msra.gmra.mxu1 %v841_v13 }
  0x51   : > { %388 = vmatpush.bf16.msrb.mxu0 %v805_v12  ;;  %402 = vmatpush.bf16.msrb.mxu1 %v841_v13  ;;  %v1023_v13 = vld [vmem:[%s1397_s3] ss:$0 sm:$0xff] }
  0x52   : > { %488 = vmatpush.bf16.msra.mxu2 %v931_v22  ;;  %512 = vmatpush.bf16.msra.mxu3 %v931_v22 }
  0x56   : > { %637 = vmatpush.bf16.msrb.mxu2 %v946_v25  ;;  %661 = vmatpush.bf16.msrb.mxu3 %v946_v25 }
  0x5a   : > { %638 = vmatpush.bf16.msrb.mxu2 %v945_v26  ;;  %662 = vmatpush.bf16.msrb.mxu3 %v945_v26 }
  0x5e   : > { %639 = vmatpush.bf16.msrb.mxu2 %v944_v29  ;;  %663 = vmatpush.bf16.msrb.mxu3 %v944_v29 }
  0x60   : > { %846 = vmatmul.msk.bf16.vlgmr.msrb.gmra.mxu0 %vm377_vm0, %v930_v14  ;;  %847 = vmatmul.msk.bf16.vlgmr.msrb.gmra.mxu1 %vm377_vm0, %v930_v14 }
  0x62   : > { %640 = vmatpush.bf16.msrb.mxu2 %v943_v42  ;;  %664 = vmatpush.bf16.msrb.mxu3 %v943_v42 }
  0x66   : > { %641 = vmatpush.bf16.msrb.mxu2 %v942_v43  ;;  %665 = vmatpush.bf16.msrb.mxu3 %v942_v43 }
  0x6a   : > { %642 = vmatpush.bf16.msrb.mxu2 %v941_v44  ;;  %666 = vmatpush.bf16.msrb.mxu3 %v941_v44 }
  0x6e   : > { %643 = vmatpush.bf16.msrb.mxu2 %v940_v45  ;;  %667 = vmatpush.bf16.msrb.mxu3 %v940_v45 }
  0x72   : > { %644 = vmatpush.bf16.msrb.mxu2 %v939_v46  ;;  %668 = vmatpush.bf16.msrb.mxu3 %v939_v46 }
  0xcd   : > { %v1338_v23 = vpop.f32.mrf.mxu0  ;;  %v1340_v24 = vpop.f32.mrf.mxu1 }
  0xce   : > { %v340_v15 = vadd.f32 %v1023_v13, %v1338_v23 }
  0xd5   : > { %v1342_v27 = vpop.f32.mrf.mxu0  ;;  %v1344_v28 = vpop.f32.mrf.mxu1 }
  0xd6   : > { %v342_v25 = vadd.f32 %v1023_v13, %v1342_v27 }
  0xdd   : > { %v390_v30 = vpop.f32.mrf.mxu0  ;;  %v404_v31 = vpop.f32.mrf.mxu1 }
  0xde   : > { %v409_v32 = vpack.c.bf16 %v404_v31, %v390_v30 }
  0xe0   : > { %v429_v36 = vunpack.c.l.b16 %v409_v32  ;;  %v501_v37 = vunpack.c.h.b16 %v409_v32 }
  0xe5   : > { %v392_v33 = vpop.f32.mrf.mxu0  ;;  %v406_v34 = vpop.f32.mrf.mxu1 }
  0xe6   : > { %v410_v35 = vpack.c.bf16 %v406_v34, %v392_v33 }
  0xe8   : > { %v430_v38 = vunpack.c.l.b16 %v410_v35  ;;  %v502_v39 = vunpack.c.h.b16 %v410_v35 }
  0xea   : > { %v431_v40 = vpack.c.b16 %v430_v38, %v429_v36  ;;  %v503_v41 = vpack.c.b16 %v502_v39, %v501_v37 }
  0xec   : > { %489 = vmatmul.bf16.vlgmr.msra.gmra.mxu2 %v431_v40  ;;  %513 = vmatmul.bf16.vlgmr.msra.gmra.mxu3 %v503_v41 }
  0xed   : > { %536 = vmatpush.bf16.msra.mxu0 %v431_v40  ;;  %550 = vmatpush.bf16.msra.mxu1 %v503_v41 }
  0xf0   : > { %880 = vmatmul.msk.bf16.vlgmr.msra.gmra.mxu0 %vm377_vm0, %v930_v14  ;;  %881 = vmatmul.msk.bf16.vlgmr.msra.gmra.mxu1 %vm377_vm0, %v930_v14  ;;  %v1024_v14 = vld [vmem:[%s1397_s3] ss:$0 sm:$0xff] }
  0xf1   : > { %v364_v16 = vadd.f32 %v1024_v14, %v1340_v24  ;;  %v366_v23 = vadd.f32 %v1024_v14, %v1344_v28 }
 0x16d   : > { %v538_v48 = vpop.f32.mrf.mxu0  ;;  %v552_v49 = vpop.f32.mrf.mxu1 }
 0x16e   : > { %v557_v51 = vmul.f32 2.0, %v538_v48  ;;  %v558_v53 = vmul.f32 2.0, %v552_v49 }
 0x16f   : > { %v490_v9 = vpop.f32.mrf.mxu2  ;;  %v514_v10 = vpop.f32.mrf.mxu3 }
 0x170   : > { %v561_v55 = vsub.f32 %v557_v51, %v525_v50  ;;  %v562_v56 = vsub.f32 %v558_v53, %v526_v52  ;;  %v497_v17 = vadd.f32 %v490_v9, %v340_v15  ;;  %v521_v18 = vadd.f32 %v514_v10, %v364_v16 }
 0x172   : > { %v565_v63 = vpack.c.bf16 %v562_v56, %v561_v55 }
 0x174   : > { %v585_v5 = vunpack.c.l.b16 %v565_v63  ;;  %v657_v6 = vunpack.c.h.b16 %v565_v63 }
 0x175   : > { %v540_v59 = vpop.f32.mrf.mxu0  ;;  %v554_v60 = vpop.f32.mrf.mxu1 }
 0x176   : > { %v559_v61 = vmul.f32 2.0, %v540_v59  ;;  %v560_v62 = vmul.f32 2.0, %v554_v60 }
 0x177   : > { %v492_v11 = vpop.f32.mrf.mxu2  ;;  %v516_v12 = vpop.f32.mrf.mxu3 }
 0x178   : > { %v563_v0 = vsub.f32 %v559_v61, %v527_v57  ;;  %v564_v1 = vsub.f32 %v560_v62, %v528_v58  ;;  %v498_v24 = vadd.f32 %v492_v11, %v342_v25  ;;  %v522_v26 = vadd.f32 %v516_v12, %v366_v23 }
 0x17a   : > { %v566_v2 = vpack.c.bf16 %v564_v1, %v563_v0 }
 0x17c   : > { %v586_v3 = vunpack.c.l.b16 %v566_v2  ;;  %v658_v4 = vunpack.c.h.b16 %v566_v2 }
 0x17e   : > { %v587_v7 = vpack.c.b16 %v586_v3, %v585_v5  ;;  %v659_v8 = vpack.c.b16 %v658_v4, %v657_v6 }
 0x180   : > { %645 = vmatmul.bf16.vlgmr.msrb.gmra.mxu2 %v587_v7  ;;  %669 = vmatmul.bf16.vlgmr.msrb.gmra.mxu3 %v659_v8 }
 0x203   : > { %v646_v19 = vpop.f32.mrf.mxu2  ;;  %v670_v20 = vpop.f32.mrf.mxu3 }
 0x204   : > { %v653_v21 = vadd.f32 %v646_v19, %v497_v17  ;;  %v677_v22 = vadd.f32 %v670_v20, %v521_v18 }
 0x206   : > { %655 = vst [vmem:[%s250_s12] sm:$0xff] %v653_v21 }
 0x207   : > { %679 = vst [vmem:[%s250_s12 + $0x8] sm:$0xff] %v677_v22 }
 0x20b   : > { %v648_v29 = vpop.f32.mrf.mxu2  ;;  %v672_v30 = vpop.f32.mrf.mxu3 }
 0x20c   : > { %v654_v31 = vadd.f32 %v648_v29, %v498_v24  ;;  %v678_v32 = vadd.f32 %v672_v30, %v522_v26 }
 0x20e   : > { %656 = vst [vmem:[%s250_s12 + $0x10] sm:$0xff] %v654_v31 }
 0x20f   : > { %680 = vst [vmem:[%s250_s12 + $0x18] sm:$0xff] %v678_v32 }
 0x210   : > { %1142 = shalt.err (!%p1139_p10)
}
 0x211   : > { %s1194_s29 = smov 256   ;;  %s1195_s5 = smov 512  }
 0x212   : > { %s1196_s6 = smov 16  }
 0x213   : > { %958 = dma.vmem_to_hbm [thread:$0]  (%p1288_p3), %s695_s20, 512, %s697_s27, %s682_s19, %s1194_s29, %s1195_s5, %s1196_s6  }
 0x214 PF: > { %s711_s7 = sand.u32 1, %s1173_s15   ;;  %p1404_p12 = scmp.ge.s32.totalorder %s1185_s18, 2 }
 0x215   : > { %s712_s12 = scalar_lea.sflag [#allocation4], %s711_s7 }
 0x216   : > { %p972_p13 = pnand %p1404_p12, %p1257_p6 }
 0x218   : > { %p973_p0 = pneg %p972_p13 }
 0x21a   : > { %1168 = dma.done.wait (%p973_p0), %s712_s12, 512  }
 0x21b   : > { %1170 = vsyncadd (%p973_p0), %s712_s12, 4294966784  ;;  %p18_p5 = scmp.ge.s32.totalorder %s1278_s10, 4   ;;  %s1405_s15 = smov %s1177_s16 }
 0x21c   : > { %s1406_s16 = smov %s1181_s17  ;;  %s1407_s17 = smov %s1294_s14 }
 0x21d   : > { %s1408_s18 = smov %s1278_s10  ;;  %20 = sbr.rel (!%p18_p5) target bundleno = 6 (0x6), region = 89 }
 0x222   :  { %718 = vsyncpa [#allocation3], 1 }
 0x223   :  { %720 = vsyncpa [#allocation3 + $0x1], 1 }
 0x224   :  { %721 = vsyncpa [#allocation6], 1 }
 0x225   :  { %722 = vsyncpa [#allocation4], 1 }
 0x226   :  { %724 = vsyncpa [#allocation4 + $0x1], 1 }

// kernel: tpu_custom_call.1
= control target key start
LH: loop header
LB: loop body
LE: loop exit
PB: predicated region body
PF: predicated region fallthrough
CT: control target
= control target key end

     0   :  { %9 = vsyncpa [#allocation3], 0  ;;  %s1394_s0 = inlined_call_operand.hbm [shape: bf16[16,512], index: 0, kind: input, shape index: {}]   ;;  %s1395_s1 = inlined_call_operand.hbm [shape: bf16[16,16], index: 1, kind: input, shape index: {}]   ;;  %s1396_s2 = inlined_call_operand.hbm [shape: bf16[384,128], index: 2, kind: input, shape index: {}]   ;;  %s1397_s3 = inlined_call_operand.vmem [shape: f32[1,128], index: 3, kind: input, shape index: {}]   ;;  %s1398_s4 = inlined_call_operand.hbm [shape: f32[16,512], index: 4, kind: output, shape index: {}]  }
   0x1   :  { %11 = vsyncpa [#allocation3 + $0x1], 0 }
   0x2   :  { %12 = vsyncpa [#allocation6], 0 }
   0x3   :  { %13 = vsyncpa [#allocation4], 0 }
   0x4   :  { %15 = vsyncpa [#allocation4 + $0x1], 0  ;;  %s1222_s15 = smov 0   ;;  %s1224_s16 = smov 0  }
   0x5   :  { %s1226_s17 = smov 0   ;;  %s1228_s18 = smov 0  }
   0x6 LB: > { %s1243_s19 = sadd.s32 4294967295, %s1185_s18   ;;  %s789_s20 = sadd.s32 4294967294, %s1185_s18   ;;  %s1185_s18 = sphi %s1228_s18, %s1408_s18   ;;  %s1181_s17 = sphi %s1226_s17, %s1407_s17   ;;  %s1177_s16 = sphi %s1224_s16, %s1406_s16   ;;  %s1173_s15 = sphi %s1222_s15, %s1405_s15  }
   0x7   : > { %p41_p0 = scmp.ne.s32.totalorder %s1177_s16, %s1173_s15  ;;  %p42_p1 = scmp.eq.s32.totalorder %s1243_s19, 0 }
   0x8   : > { %p128_p2 = scmp.eq.s32.totalorder %s1243_s19, 1  ;;  %p134_p3 = scmp.eq.s32.totalorder %s789_s20, 1 }
   0x9   : > { %p1252_p4 = por %p42_p1, %p41_p0  ;;  %p790_p5 = scmp.ge.s32.totalorder %s1185_s18, 1 }
   0xa   : > { %p1257_p6 = por %p134_p3, %p41_p0  ;;  %p141_p7 = scmp.lt.s32.totalorder %s1185_s18, 3 }
   0xb   : > { %s152_s25 = sshll.u32 %s1395_s1, 4  ;;  %s1187_s27 = smov [#allocation5]   ;;  %s153_s25 = int_to_ptr.hbm [resolvable:$true] %s152_s25 }
   0xc   : > { %p1265_p8 = pnand %p790_p5, %p141_p7  ;;  %s154_s28 = sshll.u32 %s1187_s27, 4  ;;  %s155_s28 = int_to_ptr.vmem [resolvable:$true] %s154_s28 }
   0xd   : > { %s166_s5 = sshll.u32 %s1396_s2, 4  ;;  %s1188_s6 = smov 64   ;;  %s167_s5 = int_to_ptr.hbm [resolvable:$true] %s166_s5 }
   0xe   : > { %p960_p9 = pneg %p1265_p8  ;;  %s1189_s7 = smov 4  }
   0xf   : > { %s1190_s8 = smov [#allocation7]   ;;  %s1278_s10 = sadd.s32 1, %s1185_s18  }
  0x10   : > { %p961_p10 = pnand %p960_p9, %p42_p1  ;;  %s168_s9 = sshll.u32 %s1190_s8, 4  ;;  %s169_s9 = int_to_ptr.vmem [resolvable:$true] %s168_s9 }
  0x11   : > { %s28_s11 = sadd.s32 1, %s1181_s17  ;;  %s25_s12 = ssub.s32 %s1185_s18, %s1278_s10 }
  0x12   : > { %963 = dma.hbm_to_vmem [thread:$0]  (!%p961_p10), %s153_s25, 128, %s155_s28, [#allocation6], %s1188_s6, %s1188_s6, %s1189_s7  }
  0x13   : > { %966 = dma.hbm_to_vmem [thread:$0]  (!%p961_p10), %s167_s5, 3072, %s169_s9, [#allocation6], %s1188_s6, %s1188_s6, %s1189_s7  }
  0x14   : > { %p35_p12 = scmp.ne.s32.totalorder %s1181_s17, %s1177_s16  ;;  %p26_p13 = scmp.eq.s32.totalorder %s25_s12, 0 }
  0x15   : > { %p36_p0 = scmp.eq.s32.totalorder %s1185_s18, 0  ;;  %p977_p5 = scmp.lt.s32.totalorder %s1185_s18, 2 }
  0x16   : > { %p1288_p3 = por %p128_p2, %p35_p12  ;;  %s185_s20 = sand.u32 1, %s1181_s17  }
  0x17   : > { %s1294_s14 = scalar_select %p26_p13, %s1181_s17, %s28_s11  }
  0x18   : > { %p37_p7 = por %p36_p0, %p35_p12  ;;  %s794_s23 = sshll.u32 %s185_s20, 4 }
  0x19   : > { %s919_s24 = sshll.u32 %s1185_s18, 3  ;;  %s189_s29 = scalar_lea.vmem [#allocation2], %s794_s23 }
  0x1a   : > { %s194_s28 = scalar_lea.hbm %s1394_s0, %s919_s24  ;;  %s197_s30 = sshll.u32 %s189_s29, 4  ;;  %s198_s30 = int_to_ptr.vmem [resolvable:$true] %s197_s30 }
  0x1b   : > { %s195_s5 = sshll.u32 %s194_s28, 4  ;;  %p1301_p2 = pnand %p977_p5, %p37_p7  ;;  %s196_s5 = int_to_ptr.hbm [resolvable:$true] %s195_s5 }
  0x1c   : > { %s186_s7 = scalar_lea.sflag [#allocation3], %s185_s20  ;;  %s1085_s8 = sshra.s32 %s196_s5, 4  ;;  %s1086_s8 = int_to_ptr.hbm [resolvable:$true] %s1085_s8 }
  0x1d   : > { %s1087_s9 = scalar_lea.hbm %s1086_s8, 16  ;;  %p1089_p10 = pneg %p1301_p2 }
  0x1e   : > { %p1088_p9 = scmp.ne.s32.totalorder %s1086_s8, %s1087_s9  ;;  %s1092_s23 = scalar_lea.hbm %s1394_s0, 32 }
  0x1f   : > { %p1093_p0 = scmp.lt.s32.totalorder %s1086_s8, %s1394_s0  ;;  %p1094_p5 = scmp.lt.s32.totalorder %s1092_s23, %s1087_s9 }
  0x20   : > { %p1090_p12 = pnand %p1089_p10, %p1088_p9 }
  0x21   : > { %p1095_p7 = por %p1094_p5, %p1093_p0 }
  0x22   : > { %p1091_p13 = pneg %p1090_p12 }
  0x24   : > { %p1096_p11 = pnand %p1095_p7, %p1091_p13 }
  0x26   : > { %1099 = shalt.err (!%p1096_p11)
}
  0x27   : > { %s1191_s20 = smov 256   ;;  %s1192_s27 = smov 128  }
  0x28   : > { %s1193_s28 = smov 8   ;;  %209 = sbr.rel (%p1265_p8) target bundleno = 532 (0x214), region = 36 }
  0x29   : > { %970 = dma.hbm_to_vmem [thread:$0]  (!%p1301_p2), %s196_s5, 256, %s198_s30, %s186_s7, %s1191_s20, %s1192_s27, %s1193_s28  }
  0x2a   : > { %s1318_s29 = sand.u32 (!%p1265_p8), 1, %s1177_s16  }
  0x2b   : > { %s798_s8 = sshll.u32 (!%p1265_p8), %s1318_s29, 4  ;;  %s212_s9 = scalar_lea.sflag (!%p1265_p8), [#allocation3], %s1318_s29 }
  0x2c   : > { %s1322_s11 = scalar_lea.vmem (!%p1265_p8), [#allocation2], %s798_s8 }
  0x2d   : > { %1160 = dma.done.wait (%p1252_p4), %s212_s9, 256  }
  0x2e   : > { %1162 = vsyncadd (%p1252_p4), %s212_s9, 4294967040 }
  0x2f   : > { %1164 = dma.done.wait (%p42_p1), [#allocation6], 3200  }
  0x30   : > { %1166 = vsyncadd (%p42_p1), [#allocation6], 4294964096  ;;  %v929_v0 = vld [vmem:[#allocation7 + $0x38] sm:$0xff]  ;;  %v928_v1 = vld [vmem:[#allocation7 + $0x30] sm:$0xff]  ;;  %vm377_vm0 = vcmask 130048   ;;  %s801_s6 = sshll.u32 %s1318_s29, 5 }
  0x31   : > { %330 = vmatpush.bf16.msra.mxu0 %v929_v0  ;;  %354 = vmatpush.bf16.msra.mxu1 %v929_v0  ;;  %v927_v2 = vld [vmem:[#allocation7 + $0x28] sm:$0xff]  ;;  %v926_v3 = vld [vmem:[#allocation7 + $0x20] sm:$0xff]  ;;  %v925_v4 = vld [vmem:[#allocation7 + $0x18] sm:$0xff]  ;;  %s947_s7 = sshll.u32 %s1243_s19, 4  ;;  %s250_s12 = scalar_lea.vmem [#allocation8], %s801_s6 }
  0x32   : > { %v924_v5 = vld [vmem:[#allocation7 + $0x10] sm:$0xff]  ;;  %v923_v6 = vld [vmem:[#allocation7 + $0x8] sm:$0xff]  ;;  %v922_v7 = vld [vmem:[#allocation7] sm:$0xff]  ;;  %s693_s25 = scalar_lea.hbm %s1398_s4, %s947_s7  ;;  %s694_s20 = sshll.u32 %s250_s12, 4  ;;  %s695_s20 = int_to_ptr.vmem [resolvable:$true] %s694_s20 }
  0x33   : > { %v804_v8 = vld [vmem:[%s1322_s11] sm:$0xf]  ;;  %v921_v9 = vld [vmem:[%s1322_s11 + $0x4] sm:$0xf0]  ;;  %v920_v10 = vld [vmem:[%s1322_s11 + $0x4] sm:$0xf] }
  0x34   : > { %v838_v11 = vld [vmem:[%s1322_s11 + $0x8] sm:$0xf0]  ;;  %v805_v12 = vor.u32 %v921_v9, %v804_v8  ;;  %v930_v14 = vld [vmem:[#allocation5] sm:$0xff]  ;;  %v936_v17 = vld [vmem:[#allocation7 + $0x68] sm:$0xff]  ;;  %s696_s27 = sshll.u32 %s693_s25, 4  ;;  %s682_s19 = scalar_lea.sflag [#allocation4], %s1318_s29  ;;  %s697_s27 = int_to_ptr.hbm [resolvable:$true] %s696_s27 }
  0x35   : > { %331 = vmatpush.bf16.msra.mxu0 %v928_v1  ;;  %355 = vmatpush.bf16.msra.mxu1 %v928_v1  ;;  %v841_v13 = vor.u32 %v920_v10, %v838_v11  ;;  %v938_v15 = vld [vmem:[#allocation7 + $0x78] sm:$0xff]  ;;  %v937_v16 = vld [vmem:[#allocation7 + $0x70] sm:$0xff]  ;;  %v935_v18 = vld [vmem:[#allocation7 + $0x60] sm:$0xff]  ;;  %s1129_s28 = sshra.s32 %s697_s27, 4  ;;  %s1135_s21 = scalar_lea.hbm %s1398_s4, 64  ;;  %s1130_s28 = int_to_ptr.hbm [resolvable:$true] %s1129_s28 }
  0x36   : > { %481 = vmatpush.bf16.msra.mxu2 %v938_v15  ;;  %505 = vmatpush.bf16.msra.mxu3 %v938_v15  ;;  %v934_v19 = vld [vmem:[#allocation7 + $0x58] sm:$0xff]  ;;  %v933_v20 = vld [vmem:[#allocation7 + $0x50] sm:$0xff]  ;;  %v932_v21 = vld [vmem:[#allocation7 + $0x48] sm:$0xff]  ;;  %s1131_s8 = scalar_lea.hbm %s1130_s28, 32  ;;  %p1136_p11 = scmp.lt.s32.totalorder %s1130_s28, %s1398_s4 }
  0x37   : > { %v931_v22 = vld [vmem:[#allocation7 + $0x40] sm:$0xff]  ;;  %v946_v25 = vld [vmem:[#allocation7 + $0xb8] sm:$0xff]  ;;  %v945_v26 = vld [vmem:[#allocation7 + $0xb0] sm:$0xff]  ;;  %p1132_p1 = scmp.ne.s32.totalorder %s1130_s28, %s1131_s8  ;;  %p1137_p2 = scmp.lt.s32.totalorder %s1135_s21, %s1131_s8 }
  0x38   : > { %v944_v29 = vld [vmem:[#allocation7 + $0xa8] sm:$0xff]  ;;  %v943_v42 = vld [vmem:[#allocation7 + $0xa0] sm:$0xff]  ;;  %v942_v43 = vld [vmem:[#allocation7 + $0x98] sm:$0xff] }
  0x39   : > { %332 = vmatpush.bf16.msra.mxu0 %v927_v2  ;;  %356 = vmatpush.bf16.msra.mxu1 %v927_v2  ;;  %v941_v44 = vld [vmem:[#allocation7 + $0x90] sm:$0xff]  ;;  %v940_v45 = vld [vmem:[#allocation7 + $0x88] sm:$0xff]  ;;  %v939_v46 = vld [vmem:[#allocation7 + $0x80] sm:$0xff]  ;;  %p1133_p4 = pnand %p1132_p1, %p1288_p3  ;;  %p1138_p9 = por %p1137_p2, %p1136_p11 }
  0x3a   : > { %482 = vmatpush.bf16.msra.mxu2 %v937_v16  ;;  %506 = vmatpush.bf16.msra.mxu3 %v937_v16  ;;  %v254_v47 = vld [vmem:[%s1322_s11] sm:$0xff]  ;;  %v255_v54 = vld [vmem:[%s1322_s11 + $0x8] sm:$0xff] }
  0x3b   : > { %v525_v50 = vunpack.c.l.bf16 %v254_v47  ;;  %v526_v52 = vunpack.c.h.bf16 %v254_v47  ;;  %v527_v57 = vunpack.c.l.bf16 %v255_v54  ;;  %v528_v58 = vunpack.c.h.bf16 %v255_v54  ;;  %p1134_p8 = pneg %p1133_p4 }
  0x3d   : > { %333 = vmatpush.bf16.msra.mxu0 %v926_v3  ;;  %357 = vmatpush.bf16.msra.mxu1 %v926_v3  ;;  %p1139_p10 = pnand %p1138_p9, %p1134_p8 }
  0x3e   : > { %483 = vmatpush.bf16.msra.mxu2 %v936_v17  ;;  %507 = vmatpush.bf16.msra.mxu3 %v936_v17 }
  0x41   : > { %334 = vmatpush.bf16.msra.mxu0 %v925_v4  ;;  %358 = vmatpush.bf16.msra.mxu1 %v925_v4 }
  0x42   : > { %484 = vmatpush.bf16.msra.mxu2 %v935_v18  ;;  %508 = vmatpush.bf16.msra.mxu3 %v935_v18 }
  0x45   : > { %335 = vmatpush.bf16.msra.mxu0 %v924_v5  ;;  %359 = vmatpush.bf16.msra.mxu1 %v924_v5 }
  0x46   : > { %485 = vmatpush.bf16.msra.mxu2 %v934_v19  ;;  %509 = vmatpush.bf16.msra.mxu3 %v934_v19 }
  0x49   : > { %336 = vmatpush.bf16.msra.mxu0 %v923_v6  ;;  %360 = vmatpush.bf16.msra.mxu1 %v923_v6 }
  0x4a   : > { %486 = vmatpush.bf16.msra.mxu2 %v933_v20  ;;  %510 = vmatpush.bf16.msra.mxu3 %v933_v20 }
  0x4d   : > { %337 = vmatpush.bf16.msra.mxu0 %v922_v7  ;;  %361 = vmatpush.bf16.msra.mxu1 %v922_v7 }
  0x4e   : > { %487 = vmatpush.bf16.msra.mxu2 %v932_v21  ;;  %511 = vmatpush.bf16.msra.mxu3 %v932_v21 }
  0x50   : > { %338 = vmatmul.bf16.vlgmr.msra.gmra.mxu0 %v805_v12  ;;  %362 = vmatmul.bf16.vlgmr.msra.gmra.mxu1 %v841_v13 }
  0x51   : > { %388 = vmatpush.bf16.msrb.mxu0 %v805_v12  ;;  %402 = vmatpush.bf16.msrb.mxu1 %v841_v13  ;;  %v1023_v13 = vld [vmem:[%s1397_s3] ss:$0 sm:$0xff] }
  0x52   : > { %488 = vmatpush.bf16.msra.mxu2 %v931_v22  ;;  %512 = vmatpush.bf16.msra.mxu3 %v931_v22 }
  0x56   : > { %637 = vmatpush.bf16.msrb.mxu2 %v946_v25  ;;  %661 = vmatpush.bf16.msrb.mxu3 %v946_v25 }
  0x5a   : > { %638 = vmatpush.bf16.msrb.mxu2 %v945_v26  ;;  %662 = vmatpush.bf16.msrb.mxu3 %v945_v26 }
  0x5e   : > { %639 = vmatpush.bf16.msrb.mxu2 %v944_v29  ;;  %663 = vmatpush.bf16.msrb.mxu3 %v944_v29 }
  0x60   : > { %846 = vmatmul.msk.bf16.vlgmr.msrb.gmra.mxu0 %vm377_vm0, %v930_v14  ;;  %847 = vmatmul.msk.bf16.vlgmr.msrb.gmra.mxu1 %vm377_vm0, %v930_v14 }
  0x62   : > { %640 = vmatpush.bf16.msrb.mxu2 %v943_v42  ;;  %664 = vmatpush.bf16.msrb.mxu3 %v943_v42 }
  0x66   : > { %641 = vmatpush.bf16.msrb.mxu2 %v942_v43  ;;  %665 = vmatpush.bf16.msrb.mxu3 %v942_v43 }
  0x6a   : > { %642 = vmatpush.bf16.msrb.mxu2 %v941_v44  ;;  %666 = vmatpush.bf16.msrb.mxu3 %v941_v44 }
  0x6e   : > { %643 = vmatpush.bf16.msrb.mxu2 %v940_v45  ;;  %667 = vmatpush.bf16.msrb.mxu3 %v940_v45 }
  0x72   : > { %644 = vmatpush.bf16.msrb.mxu2 %v939_v46  ;;  %668 = vmatpush.bf16.msrb.mxu3 %v939_v46 }
  0xcd   : > { %v1338_v23 = vpop.f32.mrf.mxu0  ;;  %v1340_v24 = vpop.f32.mrf.mxu1 }
  0xce   : > { %v340_v15 = vadd.f32 %v1023_v13, %v1338_v23 }
  0xd5   : > { %v1342_v27 = vpop.f32.mrf.mxu0  ;;  %v1344_v28 = vpop.f32.mrf.mxu1 }
  0xd6   : > { %v342_v25 = vadd.f32 %v1023_v13, %v1342_v27 }
  0xdd   : > { %v390_v30 = vpop.f32.mrf.mxu0  ;;  %v404_v31 = vpop.f32.mrf.mxu1 }
  0xde   : > { %v409_v32 = vpack.c.bf16 %v404_v31, %v390_v30 }
  0xe0   : > { %v429_v36 = vunpack.c.l.b16 %v409_v32  ;;  %v501_v37 = vunpack.c.h.b16 %v409_v32 }
  0xe5   : > { %v392_v33 = vpop.f32.mrf.mxu0  ;;  %v406_v34 = vpop.f32.mrf.mxu1 }
  0xe6   : > { %v410_v35 = vpack.c.bf16 %v406_v34, %v392_v33 }
  0xe8   : > { %v430_v38 = vunpack.c.l.b16 %v410_v35  ;;  %v502_v39 = vunpack.c.h.b16 %v410_v35 }
  0xea   : > { %v431_v40 = vpack.c.b16 %v430_v38, %v429_v36  ;;  %v503_v41 = vpack.c.b16 %v502_v39, %v501_v37 }
  0xec   : > { %489 = vmatmul.bf16.vlgmr.msra.gmra.mxu2 %v431_v40  ;;  %513 = vmatmul.bf16.vlgmr.msra.gmra.mxu3 %v503_v41 }
  0xed   : > { %536 = vmatpush.bf16.msra.mxu0 %v431_v40  ;;  %550 = vmatpush.bf16.msra.mxu1 %v503_v41 }
  0xf0   : > { %880 = vmatmul.msk.bf16.vlgmr.msra.gmra.mxu0 %vm377_vm0, %v930_v14  ;;  %881 = vmatmul.msk.bf16.vlgmr.msra.gmra.mxu1 %vm377_vm0, %v930_v14  ;;  %v1024_v14 = vld [vmem:[%s1397_s3] ss:$0 sm:$0xff] }
  0xf1   : > { %v364_v16 = vadd.f32 %v1024_v14, %v1340_v24  ;;  %v366_v23 = vadd.f32 %v1024_v14, %v1344_v28 }
 0x16d   : > { %v538_v48 = vpop.f32.mrf.mxu0  ;;  %v552_v49 = vpop.f32.mrf.mxu1 }
 0x16e   : > { %v557_v51 = vmul.f32 2.0, %v538_v48  ;;  %v558_v53 = vmul.f32 2.0, %v552_v49 }
 0x16f   : > { %v490_v9 = vpop.f32.mrf.mxu2  ;;  %v514_v10 = vpop.f32.mrf.mxu3 }
 0x170   : > { %v561_v55 = vsub.f32 %v557_v51, %v525_v50  ;;  %v562_v56 = vsub.f32 %v558_v53, %v526_v52  ;;  %v497_v17 = vadd.f32 %v490_v9, %v340_v15  ;;  %v521_v18 = vadd.f32 %v514_v10, %v364_v16 }
 0x172   : > { %v565_v63 = vpack.c.bf16 %v562_v56, %v561_v55 }
 0x174   : > { %v585_v5 = vunpack.c.l.b16 %v565_v63  ;;  %v657_v6 = vunpack.c.h.b16 %v565_v63 }
 0x175   : > { %v540_v59 = vpop.f32.mrf.mxu0  ;;  %v554_v60 = vpop.f32.mrf.mxu1 }
 0x176   : > { %v559_v61 = vmul.f32 2.0, %v540_v59  ;;  %v560_v62 = vmul.f32 2.0, %v554_v60 }
 0x177   : > { %v492_v11 = vpop.f32.mrf.mxu2  ;;  %v516_v12 = vpop.f32.mrf.mxu3 }
 0x178   : > { %v563_v0 = vsub.f32 %v559_v61, %v527_v57  ;;  %v564_v1 = vsub.f32 %v560_v62, %v528_v58  ;;  %v498_v24 = vadd.f32 %v492_v11, %v342_v25  ;;  %v522_v26 = vadd.f32 %v516_v12, %v366_v23 }
 0x17a   : > { %v566_v2 = vpack.c.bf16 %v564_v1, %v563_v0 }
 0x17c   : > { %v586_v3 = vunpack.c.l.b16 %v566_v2  ;;  %v658_v4 = vunpack.c.h.b16 %v566_v2 }
 0x17e   : > { %v587_v7 = vpack.c.b16 %v586_v3, %v585_v5  ;;  %v659_v8 = vpack.c.b16 %v658_v4, %v657_v6 }
 0x180   : > { %645 = vmatmul.bf16.vlgmr.msrb.gmra.mxu2 %v587_v7  ;;  %669 = vmatmul.bf16.vlgmr.msrb.gmra.mxu3 %v659_v8 }
 0x203   : > { %v646_v19 = vpop.f32.mrf.mxu2  ;;  %v670_v20 = vpop.f32.mrf.mxu3 }
 0x204   : > { %v653_v21 = vadd.f32 %v646_v19, %v497_v17  ;;  %v677_v22 = vadd.f32 %v670_v20, %v521_v18 }
 0x206   : > { %655 = vst [vmem:[%s250_s12] sm:$0xff] %v653_v21 }
 0x207   : > { %679 = vst [vmem:[%s250_s12 + $0x8] sm:$0xff] %v677_v22 }
 0x20b   : > { %v648_v29 = vpop.f32.mrf.mxu2  ;;  %v672_v30 = vpop.f32.mrf.mxu3 }
 0x20c   : > { %v654_v31 = vadd.f32 %v648_v29, %v498_v24  ;;  %v678_v32 = vadd.f32 %v672_v30, %v522_v26 }
 0x20e   : > { %656 = vst [vmem:[%s250_s12 + $0x10] sm:$0xff] %v654_v31 }
 0x20f   : > { %680 = vst [vmem:[%s250_s12 + $0x18] sm:$0xff] %v678_v32 }
 0x210   : > { %1142 = shalt.err (!%p1139_p10)
}
 0x211   : > { %s1194_s29 = smov 256   ;;  %s1195_s5 = smov 512  }
 0x212   : > { %s1196_s6 = smov 16  }
 0x213   : > { %958 = dma.vmem_to_hbm [thread:$0]  (%p1288_p3), %s695_s20, 512, %s697_s27, %s682_s19, %s1194_s29, %s1195_s5, %s1196_s6  }
 0x214 PF: > { %s711_s7 = sand.u32 1, %s1173_s15   ;;  %p1404_p12 = scmp.ge.s32.totalorder %s1185_s18, 2 }
 0x215   : > { %s712_s12 = scalar_lea.sflag [#allocation4], %s711_s7 }
 0x216   : > { %p972_p13 = pnand %p1404_p12, %p1257_p6 }
 0x218   : > { %p973_p0 = pneg %p972_p13 }
 0x21a   : > { %1168 = dma.done.wait (%p973_p0), %s712_s12, 512  }
 0x21b   : > { %1170 = vsyncadd (%p973_p0), %s712_s12, 4294966784  ;;  %p18_p5 = scmp.ge.s32.totalorder %s1278_s10, 4   ;;  %s1405_s15 = smov %s1177_s16 }
 0x21c   : > { %s1406_s16 = smov %s1181_s17  ;;  %s1407_s17 = smov %s1294_s14 }
 0x21d   : > { %s1408_s18 = smov %s1278_s10  ;;  %20 = sbr.rel (!%p18_p5) target bundleno = 6 (0x6), region = 89 }
 0x222   :  { %718 = vsyncpa [#allocation3], 1 }
 0x223   :  { %720 = vsyncpa [#allocation3 + $0x1], 1 }
 0x224   :  { %721 = vsyncpa [#allocation6], 1 }
 0x225   :  { %722 = vsyncpa [#allocation4], 1 }
 0x226   :  { %724 = vsyncpa [#allocation4 + $0x1], 1 }

</bundles_post_ra>
